<compile_context>
chip_gen: v5e
topology: v5e:2x2
jax: 0.10.0
libtpu: 0.0.40
codegen_flags: <defaults>
</compile_context>

<pallas_src>
import functools

import jax
import jax.numpy as jnp
from jax.experimental import pallas as pl
from jax.experimental.pallas import tpu as pltpu


# ---------------------------------------------------------------------------
# Helpers
# ---------------------------------------------------------------------------

def _vmem_capacity_bytes():
    try:
        cap = int(pltpu.get_tpu_info().vmem_capacity_bytes)
        if cap > 0:
            return cap
    except Exception:
        pass
    return 64 * 1024 * 1024  # v7x-conservative fallback (works on all gens)


def _vmem_limit(need_bytes, vmem_cap):
    # Ask for at most ~80% of physical VMEM; never less than 32 MiB unless the
    # chip itself is smaller.
    return int(min(int(0.8 * vmem_cap), max(2 * need_bytes, 32 * 1024 * 1024)))


_ROW_TILE_CANDIDATES = (1024, 512, 256, 128, 64, 32, 16, 8)


def _pick_row_tile(rows, sub, fits):
    """Largest row tile (multiple of `sub`, or the full extent) that fits VMEM."""
    tried = set()
    for cand in _ROW_TILE_CANDIDATES:
        t = rows if cand >= rows else max(sub, (cand // sub) * sub)
        if t in tried:
            continue
        tried.add(t)
        if fits(t):
            return t
    return None


# ---------------------------------------------------------------------------
# Kernels
# ---------------------------------------------------------------------------

def _matmul_bias_kernel(x_ref, w_ref, b_ref, o_ref):
    # x_ref: (tm, K)  w_ref: (K, tn)  b_ref: (1, tn)  o_ref: (tm, tn)
    acc = jnp.dot(x_ref[...], w_ref[...], preferred_element_type=jnp.float32)
    o_ref[...] = (acc + b_ref[...].astype(jnp.float32)).astype(o_ref.dtype)


def _chan_reduce_kernel(x_ref, w_ref, b_ref, o_ref, acc_ref):
    # Grid: (B, P_tiles, C); C is the reduction axis (innermost, "arbitrary").
    # x_ref: (tp, ps)  w_ref: (ps, N)  b_ref: (1, N)  o_ref: (tp, N)
    c = pl.program_id(2)

    @pl.when(c == 0)
    def _():
        acc_ref[...] = jnp.zeros_like(acc_ref)

    acc_ref[...] += jnp.dot(x_ref[...], w_ref[...],
                            preferred_element_type=jnp.float32)

    @pl.when(c == pl.num_programs(2) - 1)
    def _():
        o_ref[...] = (acc_ref[...] + b_ref[...].astype(jnp.float32)
                      ).astype(o_ref.dtype)


# ---------------------------------------------------------------------------
# Single (M, K) @ (K, N) + bias matmul (used for in_chans == 1 and fallbacks)
# ---------------------------------------------------------------------------

def _matmul_bias(xm, w_t, bias, out_dtype, vmem_cap):
    M, K = xm.shape
    N = w_t.shape[1]
    sub = max(8, 32 // jnp.dtype(xm.dtype).itemsize)
    budget = vmem_cap // 2  # headroom for compiler scratch / double buffering
    b2 = bias.reshape(1, N)

    def fits(tm, tn):
        # f32 upper bound; inputs/outputs double-buffered by Pallas.
        return 2 * (tm * K + K * tn + tn + tm * tn) * 4 <= budget

    # --- Preferred: full-N tiles => weight/bias blocks are grid-resident
    # (constant block index => Pallas skips the re-fetch every row tile).
    tm = _pick_row_tile(M, sub, lambda t: fits(t, N))
    if tm is not None:
        need = 2 * (tm * K + K * N + N + tm * N) * 4
        return pl.pallas_call(
            _matmul_bias_kernel,
            out_shape=jax.ShapeDtypeStruct((M, N), out_dtype),
            grid_spec=pltpu.PrefetchScalarGridSpec(
                num_scalar_prefetch=0,
                grid=(pl.cdiv(M, tm),),
                in_specs=[
                    pl.BlockSpec((tm, K), lambda i: (i, 0)),
                    pl.BlockSpec((K, N), lambda i: (0, 0)),
                    pl.BlockSpec((1, N), lambda i: (0, 0)),
                ],
                out_specs=pl.BlockSpec((tm, N), lambda i: (i, 0)),
            ),
            compiler_params=pltpu.CompilerParams(
                dimension_semantics=("parallel",),
                vmem_limit_bytes=_vmem_limit(need, vmem_cap),
            ),
            cost_estimate=pl.CostEstimate(
                flops=2 * M * K * N,
                transcendentals=0,
                bytes_accessed=(M * K + M * N) * jnp.dtype(out_dtype).itemsize
                               + (K * N + N) * w_t.dtype.itemsize,
            ),
        )(xm, w_t, b2)

    # --- Fallback: embed_dim too large to keep resident -> tile N as well.
    # N axis is OUTER so the weight block index is constant over the inner
    # M sweep (weight fetched N/tn times total, not M/tm times).
    tm = None
    tn = None
    for tn_cand in (512, 256, 128):
        tm = _pick_row_tile(M, sub, lambda t, tnc=tn_cand: fits(t, tnc))
        if tm is not None:
            tn = tn_cand
            break
    if tm is None:
        tm, tn = sub, 128
        # TODO(synk): add a K-reduction grid axis (P3) if patch_size*in_chans
        # ever grows large enough that even (sub, 128) tiles blow VMEM.

    need = 2 * (tm * K + K * tn + tn + tm * tn) * 4
    return pl.pallas_call(
        _matmul_bias_kernel,
        out_shape=jax.ShapeDtypeStruct((M, N), out_dtype),
        grid_spec=pltpu.PrefetchScalarGridSpec(
            num_scalar_prefetch=0,
            grid=(pl.cdiv(N, tn), pl.cdiv(M, tm)),  # j (N) outer, i (M) inner
            in_specs=[
                pl.BlockSpec((tm, K), lambda j, i: (i, 0)),
                pl.BlockSpec((K, tn), lambda j, i: (0, j)),
                pl.BlockSpec((1, tn), lambda j, i: (0, j)),
            ],
            out_specs=pl.BlockSpec((tm, tn), lambda j, i: (i, j)),
        ),
        compiler_params=pltpu.CompilerParams(
            dimension_semantics=("parallel", "parallel"),
            vmem_limit_bytes=_vmem_limit(need, vmem_cap),
        ),
        cost_estimate=pl.CostEstimate(
            flops=2 * M * K * N,
            transcendentals=0,
            bytes_accessed=(pl.cdiv(N, tn) * M * K + M * N)
                           * jnp.dtype(out_dtype).itemsize
                           + (K * N + N) * w_t.dtype.itemsize,
        ),
    )(xm, w_t, b2)


# ---------------------------------------------------------------------------
# Public wrapper: PatchEmbed1D forward
# ---------------------------------------------------------------------------

def patch_embed_1d(x, weight, bias, *, patch_size):
    """x: (B, C, L); weight: (embed_dim, patch_size*C) [nn.Linear layout];
    bias: (embed_dim,).  Returns (B, num_patches, embed_dim)."""
    B, C, L = x.shape
    assert L % patch_size == 0, "seq_len must be divisible by patch_size"
    P = L // patch_size
    K = patch_size * C
    N = weight.shape[0]
    assert weight.shape == (N, K)
    vmem_cap = _vmem_capacity_bytes()

    if C == 1:
        # Patchify is a pure reshape (no data movement, no extra HBM pass).
        xm = x.reshape(B * P, K)
        out = _matmul_bias(xm, weight.T, bias, x.dtype, vmem_cap)
        return out.reshape(B, P, N)

    # C > 1: avoid the full HBM transpose of x.  Read blocks straight out of
    # the free (B, C, P, ps) reshape and reduce over C on a grid axis; the
    # required permutation is applied to the tiny (K, N) weight instead.
    x4 = x.reshape(B, C, P, patch_size)
    # PyTorch permute gives row layout k = s*C + c  ->  w_perm[c, s, :] = W[:, s*C+c]
    w_perm = weight.T.reshape(patch_size, C, N).transpose(1, 0, 2)  # (C, ps, N)
    b2 = bias.reshape(1, N)

    sub = max(8, 32 // jnp.dtype(x.dtype).itemsize)
    budget = vmem_cap // 2

    def fits(tp):
        # double-buffered x/out blocks + per-channel weight + bias + f32 acc
        return (2 * (tp * patch_size + patch_size * N + N + tp * N) * 4
                + tp * N * 4) <= budget

    tp = _pick_row_tile(P, sub, fits)
    if tp is None:
        # Per-channel weight slab too large for VMEM: transpose glue + tiled matmul.
        # TODO(synk): tile N inside the channel-reduction kernel instead.
        xm = jnp.transpose(x4, (0, 2, 3, 1)).reshape(B * P, K)
        out = _matmul_bias(xm, weight.T, bias, x.dtype, vmem_cap)
        return out.reshape(B, P, N)

    need = (2 * (tp * patch_size + patch_size * N + N + tp * N) * 4
            + tp * N * 4)
    return pl.pallas_call(
        _chan_reduce_kernel,
        out_shape=jax.ShapeDtypeStruct((B, P, N), x.dtype),
        grid_spec=pltpu.PrefetchScalarGridSpec(
            num_scalar_prefetch=0,
            grid=(B, pl.cdiv(P, tp), C),  # reduction axis (C) innermost
            in_specs=[
                pl.BlockSpec((None, None, tp, patch_size),
                             lambda b, pi, c: (b, c, pi, 0)),
                pl.BlockSpec((None, patch_size, N),
                             lambda b, pi, c: (c, 0, 0)),
                pl.BlockSpec((1, N), lambda b, pi, c: (0, 0)),
            ],
            out_specs=pl.BlockSpec((None, tp, N), lambda b, pi, c: (b, pi, 0)),
            scratch_shapes=[pltpu.VMEM((tp, N), jnp.float32)],
        ),
        compiler_params=pltpu.CompilerParams(
            dimension_semantics=("parallel", "parallel", "arbitrary"),
            vmem_limit_bytes=_vmem_limit(need, vmem_cap),
        ),
        cost_estimate=pl.CostEstimate(
            flops=2 * B * P * K * N,
            transcendentals=0,
            bytes_accessed=(B * C * P * patch_size + B * P * N)
                           * x.dtype.itemsize
                           + (K * N + N) * weight.dtype.itemsize,
        ),
    )(x4, w_perm, b2)


# ---------------------------------------------------------------------------
# Reference + tests
# ---------------------------------------------------------------------------

def _reference(x, weight, bias, patch_size):
    B, C, L = x.shape
    P = L // patch_size
    xr = x.reshape(B, C, P, patch_size)
    xr = jnp.transpose(xr, (0, 2, 3, 1)).reshape(B, P, patch_size * C)
    return xr @ weight.T + bias


if __name__ == "__main__":
    key = jax.random.PRNGKey(0)
    keys = jax.random.split(key, 9)

    # Case 1: module-default style (in_chans=1), small shapes.
    B, C1, ps1, L1, N1 = 2, 1, 64, 512, 256
    x1 = jax.random.normal(keys[0], (B, C1, L1), dtype=jnp.float32)
    w1 = jax.random.normal(keys[1], (N1, ps1 * C1), dtype=jnp.float32) * 0.02
    b1 = jax.random.normal(keys[2], (N1,), dtype=jnp.float32) * 0.02
    fn1 = jax.jit(functools.partial(patch_embed_1d, patch_size=ps1))
    out1 = jax.block_until_ready(fn1(x1, w1, b1))
    ref1 = _reference(x1, w1, b1, ps1)
    assert out1.shape == (B, L1 // ps1, N1)
    assert jnp.allclose(out1, ref1, atol=1e-4, rtol=1e-4)

    # Case 2: multi-channel path (channel-reduction kernel), odd patch count.
    B2, C2, ps2, L2, N2 = 2, 4, 16, 16 * 5, 128
    x2 = jax.random.normal(keys[3], (B2, C2, L2), dtype=jnp.float32)
    w2 = jax.random.normal(keys[4], (N2, ps2 * C2), dtype=jnp.float32) * 0.02
    b2 = jax.random.normal(keys[5], (N2,), dtype=jnp.float32) * 0.02
    fn2 = jax.jit(functools.partial(patch_embed_1d, patch_size=ps2))
    out2 = jax.block_until_ready(fn2(x2, w2, b2))
    ref2 = _reference(x2, w2, b2, ps2)
    assert out2.shape == (B2, L2 // ps2, N2)
    assert jnp.allclose(out2, ref2, atol=1e-4, rtol=1e-4)

    # Case 3: ragged M (not a multiple of 8) and non-128-multiple embed_dim.
    B3, C3, ps3, L3, N3 = 3, 1, 32, 32 * 7, 96
    x3 = jax.random.normal(keys[6], (B3, C3, L3), dtype=jnp.float32)
    w3 = jax.random.normal(keys[7], (N3, ps3 * C3), dtype=jnp.float32) * 0.02
    b3 = jax.random.normal(keys[8], (N3,), dtype=jnp.float32) * 0.02
    fn3 = jax.jit(functools.partial(patch_embed_1d, patch_size=ps3))
    out3 = jax.block_until_ready(fn3(x3, w3, b3))
    ref3 = _reference(x3, w3, b3, ps3)
    assert out3.shape == (B3, L3 // ps3, N3)
    assert jnp.allclose(out3, ref3, atol=1e-4, rtol=1e-4)

    print("KERNEL_OK")
</pallas_src>

<mosaic_0001>
module attributes {stable_mosaic.version = 11 : i64} {
  func.func @_matmul_bias_kernel(%arg0: i32, %arg1: memref<16x64xf32, #tpu.memory_space<vmem>>, %arg2: memref<64x256xf32, #tpu.memory_space<vmem>>, %arg3: memref<1x256xf32, #tpu.memory_space<vmem>>, %arg4: memref<16x256xf32, #tpu.memory_space<vmem>>) attributes {dimension_semantics = [#tpu.dimension_semantics<parallel>], iteration_bounds = array<i64: 1>, scalar_prefetch = 0 : i64, scratch_operands = 0 : i64, tpu.core_type = #tpu.core_type<tc>, window_params = [{transform_indices = @transform_0, window_bounds = array<i64: 16, 64>}, {pipeline_mode = #tpu.pipeline_mode<synchronous>, transform_indices = @transform_1, window_bounds = array<i64: 64, 256>}, {pipeline_mode = #tpu.pipeline_mode<synchronous>, transform_indices = @transform_2, window_bounds = array<i64: 1, 256>}, {transform_indices = @transform_3, window_bounds = array<i64: 16, 256>}]} {
    %c0 = arith.constant 0 : index
    %c0_0 = arith.constant 0 : index
    %0 = vector.load %arg1[%c0, %c0_0] : memref<16x64xf32, #tpu.memory_space<vmem>>, vector<16x64xf32>
    %c0_1 = arith.constant 0 : index
    %c0_2 = arith.constant 0 : index
    %1 = vector.load %arg2[%c0_1, %c0_2] : memref<64x256xf32, #tpu.memory_space<vmem>>, vector<64x256xf32>
    %cst = arith.constant dense<0.000000e+00> : vector<16x256xf32>
    %2 = tpu.matmul %0, %1, %cst {dimension_numbers = #tpu.dot_dimension_numbers<[1], [0], [0], [1], [0, 0, 1, 1], [], []>} : vector<16x64xf32>, vector<64x256xf32>, vector<16x256xf32> -> vector<16x256xf32>
    %c0_3 = arith.constant 0 : index
    %c0_4 = arith.constant 0 : index
    %3 = vector.load %arg3[%c0_3, %c0_4] : memref<1x256xf32, #tpu.memory_space<vmem>>, vector<1x256xf32>
    %4 = vector.broadcast %3 : vector<1x256xf32> to vector<16x256xf32>
    %5 = arith.addf %2, %4 : vector<16x256xf32>
    %c0_5 = arith.constant 0 : index
    %c0_6 = arith.constant 0 : index
    %6 = vector.load %arg4[%c0_5, %c0_6] : memref<16x256xf32, #tpu.memory_space<vmem>>, vector<16x256xf32>
    tpu.vector_store %arg4[%c0_5, %c0_6], %5 {strides = array<i32>} : memref<16x256xf32, #tpu.memory_space<vmem>>, vector<16x256xf32>,
    return
  }
  func.func @transform_0(%arg0: i32) -> (i32, i32) {
    %c0_i32 = arith.constant 0 : i32
    %c0_i32_0 = arith.constant 0 : i32
    return %arg0, %c0_i32 : i32, i32
  }
  func.func @transform_1(%arg0: i32) -> (i32, i32) {
    %c0_i32 = arith.constant 0 : i32
    %c0_i32_0 = arith.constant 0 : i32
    %c0_i32_1 = arith.constant 0 : i32
    return %c0_i32, %c0_i32_0 : i32, i32
  }
  func.func @transform_2(%arg0: i32) -> (i32, i32) {
    %c0_i32 = arith.constant 0 : i32
    %c0_i32_0 = arith.constant 0 : i32
    %c0_i32_1 = arith.constant 0 : i32
    return %c0_i32, %c0_i32_0 : i32, i32
  }
  func.func @transform_3(%arg0: i32) -> (i32, i32) {
    %c0_i32 = arith.constant 0 : i32
    %c0_i32_0 = arith.constant 0 : i32
    return %arg0, %c0_i32 : i32, i32
  }
}

</mosaic_0001>

<bundles_post_ra>
// kernel: patch_embed_1d.1
= control target key start
LH: loop header
LB: loop body
LE: loop exit
PB: predicated region body
PF: predicated region fallthrough
CT: control target
= control target key end

     0   :  { %8 = vsyncpa [#allocation3], 0  ;;  %s252_s0 = inlined_call_operand.vmem [shape: f32[16,64], index: 0, kind: input, shape index: {}]   ;;  %s253_s1 = inlined_call_operand.hbm [shape: f32[64,256], index: 1, kind: input, shape index: {}]   ;;  %s254_s2 = inlined_call_operand.vmem [shape: f32[1,256], index: 2, kind: input, shape index: {}]   ;;  %s255_s3 = inlined_call_operand.hbm [shape: f32[16,256], index: 3, kind: output, shape index: {}]  }
   0x1   :  { %9 = vsyncpa [#allocation4], 0  ;;  %s16_s14 = sshll.u32 %s253_s1, 4  ;;  %s207_s15 = smov [#allocation2]   ;;  %s17_s14 = int_to_ptr.hbm [resolvable:$true] %s16_s14 }
   0x2   :  { %s18_s16 = sshll.u32 %s207_s15, 4  ;;  %s208_s17 = smov 256   ;;  %s19_s16 = int_to_ptr.vmem [resolvable:$true] %s18_s16 }
   0x3   :  { %s209_s18 = smov 16  }
   0x4   :  { %24 = dma.hbm_to_vmem [thread:$0]  %s17_s14, 2048, %s19_s16, [#allocation3], %s208_s17, %s208_s17, %s209_s18  }
   0x5   :  { %203 = dma.done.wait [#allocation3], 2048  }
   0x6   :  { %204 = vsyncadd [#allocation3], 4294965248  ;;  %v47_v0 = vld [vmem:[#allocation2 + $0x70] sm:$0xff]  ;;  %v48_v1 = vld [vmem:[#allocation2 + $0x78] sm:$0xff]  ;;  %vm55_vm0 = vcmask 523264   ;;  %s210_s24 = smov [#allocation5]  }
   0x7   :  { %v45_v2 = vld [vmem:[#allocation2 + $0x60] sm:$0xff]  ;;  %135 = vmatpush.msra.mxu2 %v47_v0  ;;  %143 = vmatpush.msra.mxu3 %v48_v1  ;;  %v46_v3 = vld [vmem:[#allocation2 + $0x68] sm:$0xff]  ;;  %v43_v4 = vld [vmem:[#allocation2 + $0x50] sm:$0xff]  ;;  %s116_s25 = sshll.u32 %s210_s24, 4  ;;  %s118_s27 = sshll.u32 %s255_s3, 4  ;;  %s117_s25 = int_to_ptr.vmem [resolvable:$true] %s116_s25  ;;  %s119_s27 = int_to_ptr.hbm [resolvable:$true] %s118_s27 }
   0x8   :  { %v44_v5 = vld [vmem:[#allocation2 + $0x58] sm:$0xff]  ;;  %70 = vmatpush.msra.mxu0 %v47_v0  ;;  %93 = vmatpush.msra.mxu1 %v48_v1  ;;  %v41_v6 = vld [vmem:[#allocation2 + $0x40] sm:$0xff]  ;;  %v42_v7 = vld [vmem:[#allocation2 + $0x48] sm:$0xff] }
   0x9   :  { %136 = vmatpush.msra.mxu2 %v45_v2  ;;  %144 = vmatpush.msra.mxu3 %v46_v3  ;;  %v39_v8 = vld [vmem:[#allocation2 + $0x30] sm:$0xff]  ;;  %v40_v9 = vld [vmem:[#allocation2 + $0x38] sm:$0xff]  ;;  %v37_v10 = vld [vmem:[#allocation2 + $0x20] sm:$0xff] }
   0xa   :  { %71 = vmatpush.msra.mxu0 %v45_v2  ;;  %94 = vmatpush.msra.mxu1 %v46_v3  ;;  %v38_v11 = vld [vmem:[#allocation2 + $0x28] sm:$0xff]  ;;  %v35_v12 = vld [vmem:[#allocation2 + $0x10] sm:$0xff]  ;;  %v36_v13 = vld [vmem:[#allocation2 + $0x18] sm:$0xff] }
   0xb   :  { %137 = vmatpush.msra.mxu2 %v43_v4  ;;  %145 = vmatpush.msra.mxu3 %v44_v5  ;;  %v33_v14 = vld [vmem:[#allocation2] sm:$0xff]  ;;  %v34_v15 = vld [vmem:[#allocation2 + $0x8] sm:$0xff] }
   0xc   :  { %72 = vmatpush.msra.mxu0 %v43_v4  ;;  %95 = vmatpush.msra.mxu1 %v44_v5  ;;  %v32_v16 = vld [vmem:[%s252_s0 + $0x8] sm:$0xff]  ;;  %v31_v17 = vld [vmem:[%s252_s0] sm:$0xff] }
   0xd   :  { %138 = vmatpush.msra.mxu2 %v41_v6  ;;  %146 = vmatpush.msra.mxu3 %v42_v7  ;;  %v49_v18 = vld [vmem:[%s254_s2] sm:$0x3] }
   0xe   :  { %73 = vmatpush.msra.mxu0 %v41_v6  ;;  %96 = vmatpush.msra.mxu1 %v42_v7  ;;  %v51_v19 = vperm.slane %v49_v18, 0  ;;  %v52_v20 = vperm.slane %v49_v18, 1 }
   0xf   :  { %139 = vmatpush.msra.mxu2 %v39_v8  ;;  %147 = vmatpush.msra.mxu3 %v40_v9 }
  0x10   :  { %74 = vmatpush.msra.mxu0 %v39_v8  ;;  %97 = vmatpush.msra.mxu1 %v40_v9 }
  0x11   :  { %140 = vmatpush.msra.mxu2 %v37_v10  ;;  %148 = vmatpush.msra.mxu3 %v38_v11 }
  0x12   :  { %75 = vmatpush.msra.mxu0 %v37_v10  ;;  %98 = vmatpush.msra.mxu1 %v38_v11 }
  0x13   :  { %141 = vmatpush.msra.mxu2 %v35_v12  ;;  %149 = vmatpush.msra.mxu3 %v36_v13 }
  0x14   :  { %76 = vmatpush.msra.mxu0 %v35_v12  ;;  %99 = vmatpush.msra.mxu1 %v36_v13 }
  0x15   :  { %142 = vmatpush.msra.mxu2 %v33_v14  ;;  %150 = vmatpush.msra.mxu3 %v34_v15 }
  0x16   :  { %132 = vmatmul.msk.f32.vlgmr.msra.gmra.mxu2 %vm55_vm0, %v32_v16  ;;  %134 = vmatmul.msk.f32.vlgmr.msra.gmra.mxu3 %vm55_vm0, %v32_v16 }
  0x17   :  { %77 = vmatpush.msra.mxu0 %v33_v14  ;;  %100 = vmatpush.msra.mxu1 %v34_v15 }
  0x18   :  { %131 = vmatmul.msk.f32.vlgmr.msra.gmra.mxu0 %vm55_vm0, %v31_v17  ;;  %133 = vmatmul.msk.f32.vlgmr.msra.gmra.mxu1 %vm55_vm0, %v31_v17 }
  0x95   :  { %v79_v21 = vpop.f32.mrf.mxu0  ;;  %v102_v22 = vpop.f32.mrf.mxu1 }
  0x96   :  { %v80_v23 = vadd.f32 %v79_v21, %v51_v19  ;;  %v103_v24 = vadd.f32 %v102_v22, %v52_v20 }
  0x98   :  { %108 = vst [vmem:[#allocation5] sm:$0xff] %v80_v23 }
  0x99   :  { %v82_v25 = vpop.f32.mrf.mxu2  ;;  %109 = vst [vmem:[#allocation5 + $0x8] sm:$0xff] %v103_v24  ;;  %v105_v26 = vpop.f32.mrf.mxu3 }
  0x9a   :  { %v83_v27 = vadd.f32 %v82_v25, %v51_v19  ;;  %v106_v28 = vadd.f32 %v105_v26, %v52_v20 }
  0x9c   :  { %110 = vst [vmem:[#allocation5 + $0x10] sm:$0xff] %v83_v27 }
  0x9d   :  { %111 = vst [vmem:[#allocation5 + $0x18] sm:$0xff] %v106_v28 }
  0x9e   :  { %124 = dma.vmem_to_hbm [thread:$0]  %s117_s25, 512, %s119_s27, [#allocation4], %s208_s17, %s208_s17, %s209_s18  }
  0x9f   :  { %205 = dma.done.wait [#allocation4], 512  }
  0xa0   :  { %206 = vsyncadd [#allocation4], 4294966784 }
  0xa1   :  { %129 = vsyncpa [#allocation3], 1 }
  0xa2   :  { %130 = vsyncpa [#allocation4], 1 }

</bundles_post_ra>
